<compile_context>
chip_gen: v5e
topology: v5e:2x2
jax: 0.10.0
libtpu: 0.0.40
codegen_flags: <defaults>
</compile_context>

<pallas_src>
import math

import jax
import jax.numpy as jnp
from jax.experimental import pallas as pl
from jax.experimental.pallas import tpu as pltpu


def _standardize_kernel(x_ref, scale_ref, shift_ref, o_ref):
    """Elementwise y = x * scale + shift in f32; cast only on the final store."""
    x = x_ref[...].astype(jnp.float32)
    o_ref[...] = (x * scale_ref[...] + shift_ref[...]).astype(o_ref.dtype)


def _lcm(a, b):
    return a * b // math.gcd(a, b)


def _target_block_bytes():
    """Per-chip-generation x-block size (bytes).

    HBM-bound streaming kernel: bigger blocks amortize the ~0.35 us per-grid-
    step overhead, but must stay well inside the scoped-VMEM default (16 MiB
    on v5e). Gated on the device kind; unknown devices fall back to 1 MiB.
    """
    try:
        kind = jax.devices()[0].device_kind.lower()
    except Exception:  # defensive: never fail the wrapper over a HW query
        kind = ""
    if "7" in kind:                      # v7x: ~3.2 TB/s HBM; 2*(in+out)*4MiB = 16MiB
        return 4 << 20
    if "v6" in kind or "6e" in kind:     # v6e: ~1 MiB is already ~85% of roofline
        return 2 << 20
    return 1 << 20                       # v5e / unknown: conservative


def _run_packed(x2, scale_l, shift_l, block_rows, donate):
    rows, lane = x2.shape
    grid = (pl.cdiv(rows, block_rows),)  # partial last block handled (masked) by Pallas
    return pl.pallas_call(
        _standardize_kernel,
        out_shape=jax.ShapeDtypeStruct((rows, lane), x2.dtype),
        grid_spec=pl.GridSpec(
            grid=grid,
            in_specs=[
                pl.BlockSpec((block_rows, lane), lambda i: (i, 0)),
                pl.BlockSpec((1, lane), lambda i: (0, 0)),
                pl.BlockSpec((1, lane), lambda i: (0, 0)),
            ],
            out_specs=pl.BlockSpec((block_rows, lane), lambda i: (i, 0)),
        ),
        compiler_params=pltpu.CompilerParams(
            dimension_semantics=("parallel",),
        ),
        input_output_aliases=({0: 0} if donate else {}),
    )(x2, scale_l, shift_l)


def pyg_standardize(x, mean, std, *, block_rows=None, donate_x=False):
    """Pallas implementation of PygStandardize.forward applied to g.x.

    x:    [N, F] node features
    mean: [F] featurewise mean
    std:  [F] featurewise std
    Returns (x - mean) / std with x's dtype; statistics kept in float32.
    Set donate_x=True only if the caller donates x (in-place update).
    """
    N, F = x.shape
    itemsize = jnp.dtype(x.dtype).itemsize

    scale = 1.0 / std.astype(jnp.float32)          # reciprocal-multiply, not divide
    shift = -mean.astype(jnp.float32) * scale      # y = x*scale + shift == (x-mean)/std

    # Lane packing: view the row-major data as (rows, lane) with lane a multiple
    # of F (so the per-feature pattern repeats exactly within each packed row)
    # and of 128 (full-lane unmasked vst). Pure reshape -> zero extra HBM traffic.
    lane = _lcm(F, 128)
    rpl = lane // F                                 # original rows per packed row

    n_main = (N // rpl) * rpl                       # lane-aligned prefix of x
    if n_main == 0:
        # Fewer rows than one packed row: data is tiny, plain jnp.
        return (x.astype(jnp.float32) * scale + shift).astype(x.dtype)

    rows = (n_main * F) // lane

    # Row tiling: chip-sized blocks; if a single block would cover everything,
    # split in two (when possible) so both v7x TensorCores get work and the
    # BlockSpec pipeline can double-buffer.
    sublane = {4: 8, 2: 16, 1: 32}.get(itemsize, 8)
    if block_rows is None:
        block_rows = max(
            sublane,
            (_target_block_bytes() // (lane * itemsize)) // sublane * sublane,
        )
    if block_rows >= rows:
        half = (rows // 2) // sublane * sublane
        block_rows = half if half >= sublane else rows
    block_rows = min(block_rows, rows)

    # Per-lane affine params, tiled across the packed width; two (1, lane)
    # inputs so the kernel needs no per-step sublane slicing.
    scale_l = jnp.tile(scale, rpl).reshape(1, lane)
    shift_l = jnp.tile(shift, rpl).reshape(1, lane)

    x_main = x if n_main == N else x[:n_main]
    x2 = x_main.reshape(rows, lane)                 # contiguous row-major -> free
    out_main = _run_packed(x2, scale_l, shift_l, block_rows,
                           donate_x and n_main == N)
    out_main = out_main.reshape(n_main, F)

    if n_main == N:
        return out_main
    # < rpl leftover rows: handled with plain jnp instead of padding the kernel.
    tail = (x[n_main:].astype(jnp.float32) * scale + shift).astype(x.dtype)
    return jnp.concatenate([out_main, tail], axis=0)


if __name__ == "__main__":
    key = jax.random.PRNGKey(0)
    k_x, k_m, k_s = jax.random.split(key, 3)

    # Atom-feature standardization shapes: N=16 nodes, F=32 features.
    N, F = 16, 32
    x = jax.random.normal(k_x, (N, F), dtype=jnp.float32)
    mean = jax.random.normal(k_m, (F,), dtype=jnp.float32)
    std = jax.random.uniform(k_s, (F,), dtype=jnp.float32) + 0.5  # keep > 0

    ref = (x - mean[None, :]) / std[None, :]
    out = jax.block_until_ready(pyg_standardize(x, mean, std))
    assert jnp.allclose(out, ref, atol=1e-5, rtol=1e-5), "mismatch (aligned path)"

    # Exercise the unaligned-N tail path and the partial last grid block
    # (Pallas masked-edge handling) with a forced small block size.
    N2 = 37
    x_u = jax.random.normal(k_x, (N2, F), dtype=jnp.float32)
    ref_u = (x_u - mean[None, :]) / std[None, :]
    out_u = jax.block_until_ready(pyg_standardize(x_u, mean, std, block_rows=8))
    assert jnp.allclose(out_u, ref_u, atol=1e-5, rtol=1e-5), "mismatch (unaligned path)"

    # TODO(synk): the PyG `Data` graph container plumbing (g.x assignment) is
    # host-side bookkeeping with no Pallas equivalent; only the tensor op is
    # implemented here.
    print("KERNEL_OK")
</pallas_src>

<mosaic_0001>
module attributes {stable_mosaic.version = 11 : i64} {
  func.func @_standardize_kernel(%arg0: i32, %arg1: memref<4x128xf32, #tpu.memory_space<vmem>>, %arg2: memref<1x128xf32, #tpu.memory_space<vmem>>, %arg3: memref<1x128xf32, #tpu.memory_space<vmem>>, %arg4: memref<4x128xf32, #tpu.memory_space<vmem>>) attributes {dimension_semantics = [#tpu.dimension_semantics<parallel>], iteration_bounds = array<i64: 1>, scalar_prefetch = 0 : i64, scratch_operands = 0 : i64, tpu.core_type = #tpu.core_type<tc>, window_params = [{transform_indices = @transform_0, window_bounds = array<i64: 4, 128>}, {pipeline_mode = #tpu.pipeline_mode<synchronous>, transform_indices = @transform_1, window_bounds = array<i64: 1, 128>}, {pipeline_mode = #tpu.pipeline_mode<synchronous>, transform_indices = @transform_2, window_bounds = array<i64: 1, 128>}, {transform_indices = @transform_3, window_bounds = array<i64: 4, 128>}]} {
    %c0 = arith.constant 0 : index
    %c0_0 = arith.constant 0 : index
    %0 = vector.load %arg1[%c0, %c0_0] : memref<4x128xf32, #tpu.memory_space<vmem>>, vector<4x128xf32>
    %c0_1 = arith.constant 0 : index
    %c0_2 = arith.constant 0 : index
    %1 = vector.load %arg2[%c0_1, %c0_2] : memref<1x128xf32, #tpu.memory_space<vmem>>, vector<1x128xf32>
    %2 = vector.broadcast %1 : vector<1x128xf32> to vector<4x128xf32>
    %3 = arith.mulf %0, %2 : vector<4x128xf32>
    %c0_3 = arith.constant 0 : index
    %c0_4 = arith.constant 0 : index
    %4 = vector.load %arg3[%c0_3, %c0_4] : memref<1x128xf32, #tpu.memory_space<vmem>>, vector<1x128xf32>
    %5 = vector.broadcast %4 : vector<1x128xf32> to vector<4x128xf32>
    %6 = arith.addf %3, %5 : vector<4x128xf32>
    %c0_5 = arith.constant 0 : index
    %c0_6 = arith.constant 0 : index
    %7 = vector.load %arg4[%c0_5, %c0_6] : memref<4x128xf32, #tpu.memory_space<vmem>>, vector<4x128xf32>
    tpu.vector_store %arg4[%c0_5, %c0_6], %6 {strides = array<i32>} : memref<4x128xf32, #tpu.memory_space<vmem>>, vector<4x128xf32>,
    return
  }
  func.func @transform_0(%arg0: i32) -> (i32, i32) {
    %c0_i32 = arith.constant 0 : i32
    %c0_i32_0 = arith.constant 0 : i32
    return %arg0, %c0_i32 : i32, i32
  }
  func.func @transform_1(%arg0: i32) -> (i32, i32) {
    %c0_i32 = arith.constant 0 : i32
    %c0_i32_0 = arith.constant 0 : i32
    %c0_i32_1 = arith.constant 0 : i32
    return %c0_i32, %c0_i32_0 : i32, i32
  }
  func.func @transform_2(%arg0: i32) -> (i32, i32) {
    %c0_i32 = arith.constant 0 : i32
    %c0_i32_0 = arith.constant 0 : i32
    %c0_i32_1 = arith.constant 0 : i32
    return %c0_i32, %c0_i32_0 : i32, i32
  }
  func.func @transform_3(%arg0: i32) -> (i32, i32) {
    %c0_i32 = arith.constant 0 : i32
    %c0_i32_0 = arith.constant 0 : i32
    return %arg0, %c0_i32 : i32, i32
  }
}

</mosaic_0001>

<bundles_post_ra>
// kernel: tpu_custom_call.1
= control target key start
LH: loop header
LB: loop body
LE: loop exit
PB: predicated region body
PF: predicated region fallthrough
CT: control target
= control target key end

     0   :  { %8 = vsyncpa [#allocation3], 0  ;;  %s191_s0 = inlined_call_operand.hbm [shape: f32[4,128], index: 0, kind: input, shape index: {}]   ;;  %s192_s1 = inlined_call_operand.hbm [shape: f32[1,128], index: 1, kind: input, shape index: {}]   ;;  %s193_s2 = inlined_call_operand.vmem [shape: f32[1,128], index: 2, kind: input, shape index: {}]   ;;  %s194_s3 = inlined_call_operand.hbm [shape: f32[4,128], index: 3, kind: output, shape index: {}]  }
   0x1   :  { %9 = vsyncpa [#allocation6], 0 }
   0x2   :  { %10 = vsyncpa [#allocation4], 0  ;;  %s16_s14 = sshll.u32 %s191_s0, 4  ;;  %s156_s15 = smov [#allocation2]   ;;  %s17_s14 = int_to_ptr.hbm [resolvable:$true] %s16_s14 }
   0x3   :  { %s18_s16 = sshll.u32 %s156_s15, 4  ;;  %s27_s19 = sshll.u32 %s192_s1, 4  ;;  %s19_s16 = int_to_ptr.vmem [resolvable:$true] %s18_s16  ;;  %s28_s19 = int_to_ptr.hbm [resolvable:$true] %s27_s19 }
   0x4   :  { %21 = dma.hbm_to_vmem [thread:$0]  %s17_s14, 64, %s19_s16, [#allocation3]  }
   0x5   :  { %s157_s20 = smov [#allocation5]  }
   0x6   :  { %s29_s21 = sshll.u32 %s157_s20, 4  ;;  %s30_s21 = int_to_ptr.vmem [resolvable:$true] %s29_s21 }
   0x7   :  { %32 = dma.hbm_to_vmem [thread:$0]  %s28_s19, 16, %s30_s21, [#allocation6]  }
   0x8   :  { %150 = dma.done.wait [#allocation3], 64  }
   0x9   :  { %151 = vsyncadd [#allocation3], 4294967232 }
   0xa   :  { %152 = dma.done.wait [#allocation6], 16  }
   0xb   :  { %153 = vsyncadd [#allocation6], 4294967280  ;;  %v43_v0 = vld [vmem:[#allocation2] sm:$0xf]  ;;  %v76_v1 = vld [vmem:[#allocation5] ss:$0 sm:$0xff] }
   0xc   :  { %v77_v2 = vld [vmem:[%s193_s2] ss:$0 sm:$0xff]  ;;  %s158_s23 = smov [#allocation7]   ;;  %s62_s26 = sshll.u32 %s194_s3, 4  ;;  %v48_v3 = vmul.f32 %v76_v1, %v43_v0  ;;  %s63_s26 = int_to_ptr.hbm [resolvable:$true] %s62_s26 }
   0xd   :  { %s60_s24 = sshll.u32 %s158_s23, 4  ;;  %s61_s24 = int_to_ptr.vmem [resolvable:$true] %s60_s24 }
   0xe   :  { %v53_v4 = vadd.f32 %v77_v2, %v48_v3 }
  0x10   :  { %54 = vst [vmem:[#allocation7] sm:$0xf] %v53_v4 }
  0x11   :  { %65 = dma.vmem_to_hbm [thread:$0]  %s61_s24, 64, %s63_s26, [#allocation4]  }
  0x12   :  { %154 = dma.done.wait [#allocation4], 64  }
  0x13   :  { %155 = vsyncadd [#allocation4], 4294967232 }
  0x14   :  { %70 = vsyncpa [#allocation3], 1 }
  0x15   :  { %71 = vsyncpa [#allocation6], 1 }
  0x16   :  { %72 = vsyncpa [#allocation4], 1 }

</bundles_post_ra>
